<compile_context>
chip_gen: v6e
topology: v6e:2x2x1
jax: 0.10.0
libtpu: 0.0.40
codegen_flags: <defaults>
</compile_context>

<pallas_src>
import functools

import jax
import jax.numpy as jnp
from jax.experimental import pallas as pl
from jax.experimental.pallas import tpu as pltpu

_PAD = 128  # lane width; every layer's in/out feature dim is padded to 128.


def _round_up(x, m):
    return (x + m - 1) // m * m


def _oracle_q_kernel(act_ref, w_ref, b_ref, out_ref):
    """act_ref: (tile_b, 128)  lane-packed [e_t | x_t | a_t | a_next | 0...]
    w_ref:   (6*128, 128)    packed weight blocks (layout: see pack_params)
    b_ref:   (8, 128)        f32 bias rows; row i pairs with block i (rows 3,6,7 zero)
    out_ref: (tile_b, 128)   f32; lanes [0,enc) = encoding, [enc, enc+num_out) = q
    """
    P = _PAD
    cdt = w_ref.dtype  # MXU input dtype: bf16 in production, f32 for parity tests

    def W(i):
        return w_ref[i * P:(i + 1) * P, :]

    def bias(i):
        return b_ref[i:i + 1, :]

    acts = act_ref[...]

    # Block 0 fuses we1 (-> lanes [0,eh0)) and wq1_xaan (-> lanes [eh0,eh0+qh0)):
    # one matmul yields both the encoder hidden-1 pre-activation and the q-layer-1
    # contribution that does not depend on the encoder.
    z = jnp.dot(acts, W(0), preferred_element_type=jnp.float32) + bias(0)

    # ---- environment encoder: relu MLP -> tanh logits ----
    # relu over all 128 lanes is safe: the q lanes of z only hit all-zero rows of W(1).
    h = jnp.maximum(z, 0.0)
    h = jnp.maximum(
        jnp.dot(h.astype(cdt), W(1), preferred_element_type=jnp.float32) + bias(1), 0.0)
    enc = jnp.tanh(
        jnp.dot(h.astype(cdt), W(2), preferred_element_type=jnp.float32) + bias(2))

    # ---- q head: relu MLP -> linear logits ----
    # bq1 already lives inside bias(0)/z; W(3) (wq1_enc) carries no bias.
    g = jnp.maximum(
        z + jnp.dot(enc.astype(cdt), W(3), preferred_element_type=jnp.float32), 0.0)
    g = jnp.maximum(
        jnp.dot(g.astype(cdt), W(4), preferred_element_type=jnp.float32) + bias(4), 0.0)
    q = jnp.dot(g.astype(cdt), W(5), preferred_element_type=jnp.float32) + bias(5)

    # enc is nonzero only in lanes [0, enc_size), q only in [enc_size, enc_size+num_out);
    # one add merges them into a single lane-dense output slab.
    out_ref[...] = enc + q


def pack_params(params, x_dim, a_dim, dtype=jnp.bfloat16):
    """Packs all weights/biases into Pallas-ready buffers.  Call ONCE, not per forward.

    w_pack (6*128, 128) `dtype` blocks:
      0: we1      rows [0,e)          -> cols [0,eh0)        (fused with)
         wq1_xaan rows [e, e+x+2a)    -> cols [eh0, eh0+qh0)
      1: we2      rows [0,eh0)        -> cols [0,eh1)
      2: wel      rows [0,eh1)        -> cols [0,enc)
      3: wq1_enc  rows [0,enc)        -> cols [eh0, eh0+qh0)
      4: wq2      rows [eh0, eh0+qh0) -> cols [0,qh1)
      5: wql      rows [0,qh1)        -> cols [enc, enc+num_outputs)
    b_pack (8, 128) f32: row i = bias of block i (row 3 zero; rows 6,7 pad).
    """
    f32 = jnp.float32
    we1 = jnp.asarray(params["we1"], f32); be1 = jnp.asarray(params["be1"], f32).reshape(-1)
    we2 = jnp.asarray(params["we2"], f32); be2 = jnp.asarray(params["be2"], f32).reshape(-1)
    wel = jnp.asarray(params["wel"], f32); bel = jnp.asarray(params["bel"], f32).reshape(-1)
    wq1 = jnp.asarray(params["wq1"], f32); bq1 = jnp.asarray(params["bq1"], f32).reshape(-1)
    wq2 = jnp.asarray(params["wq2"], f32); bq2 = jnp.asarray(params["bq2"], f32).reshape(-1)
    wql = jnp.asarray(params["wql"], f32); bql = jnp.asarray(params["bql"], f32).reshape(-1)

    e_dim, eh0 = we1.shape
    eh1 = we2.shape[1]
    enc = wel.shape[1]
    q_in, qh0 = wq1.shape
    qh1 = wq2.shape[1]
    no = wql.shape[1]
    xaan = x_dim + 2 * a_dim
    colq = eh0  # lane offset of the q path inside the fused blocks

    assert q_in == xaan + enc, "wq1 rows must match [x, a, enc, a_next]"
    assert e_dim + xaan <= _PAD, "fused input slab needs e_dim + x + 2a <= 128"
    assert colq + qh0 <= _PAD and eh1 <= _PAD and qh1 <= _PAD
    assert enc + no <= _PAD, "merged output slab needs enc_size + num_outputs <= 128"

    # wq1 rows follow pi = [x_t, a_t, enc, a_next]; split out the enc rows.
    xa = x_dim + a_dim
    wq1_xaan = jnp.concatenate([wq1[:xa], wq1[xa + enc:]], axis=0)
    wq1_enc = wq1[xa:xa + enc]

    def blk():
        return jnp.zeros((_PAD, _PAD), f32)

    b0 = blk().at[:e_dim, :eh0].set(we1)
    b0 = b0.at[e_dim:e_dim + xaan, colq:colq + qh0].set(wq1_xaan)
    b1 = blk().at[:eh0, :eh1].set(we2)
    b2 = blk().at[:eh1, :enc].set(wel)
    b3 = blk().at[:enc, colq:colq + qh0].set(wq1_enc)
    b4 = blk().at[colq:colq + qh0, :qh1].set(wq2)
    b5 = blk().at[:qh1, enc:enc + no].set(wql)
    w_pack = jnp.concatenate([b0, b1, b2, b3, b4, b5], axis=0).astype(dtype)

    def brow():
        return jnp.zeros((1, _PAD), f32)

    r0 = brow().at[0, :eh0].set(be1).at[0, colq:colq + qh0].set(bq1)
    r1 = brow().at[0, :eh1].set(be2)
    r2 = brow().at[0, :enc].set(bel)
    r4 = brow().at[0, :qh1].set(bq2)
    r5 = brow().at[0, enc:enc + no].set(bql)
    b_pack = jnp.concatenate([r0, r1, r2, brow(), r4, r5, brow(), brow()], axis=0)
    return w_pack, b_pack


@functools.partial(jax.jit, static_argnames=("enc_size", "num_outputs", "max_tile_b"))
def oracle_q_forward(a_t, e_t, x_t, a_next, w_pack, b_pack, *,
                     enc_size, num_outputs, max_tile_b=512):
    """Full OracleQModel forward in one Pallas kernel. Returns (q_logits, encoding)."""
    B = a_t.shape[0]
    feat = e_t.shape[1] + x_t.shape[1] + 2 * a_t.shape[1]
    assert feat <= _PAD
    cdt = w_pack.dtype  # bf16 (MXU-native) in production, f32 for exact parity

    # Big enough tile to amortize the ~0.35us/step overhead, but <= ceil(B/2) rounded
    # to 8 so the batch grid has >=2 steps and v7x's second TensorCore gets work.
    tile_b = max(8, min(max_tile_b, _round_up(-(-B // 2), 8)))
    b_pad = _round_up(B, tile_b)

    # Single lane-packed (b_pad, 128) activation slab built with one concat fusion
    # (no full-slab zeros + .at[].set() passes): [e_t | x_t | a_t | a_next | 0...].
    parts = [e_t.astype(cdt), x_t.astype(cdt), a_t.astype(cdt), a_next.astype(cdt)]
    if feat < _PAD:
        parts.append(jnp.zeros((B, _PAD - feat), cdt))
    acts = jnp.concatenate(parts, axis=1)
    if b_pad > B:
        acts = jnp.concatenate([acts, jnp.zeros((b_pad - B, _PAD), cdt)], axis=0)

    grid = (b_pad // tile_b,)
    out = pl.pallas_call(
        _oracle_q_kernel,
        out_shape=jax.ShapeDtypeStruct((b_pad, _PAD), jnp.float32),
        grid=grid,
        in_specs=[
            pl.BlockSpec((tile_b, _PAD), lambda i: (i, 0)),   # batch-tiled activations
            pl.BlockSpec(w_pack.shape, lambda i: (0, 0)),     # weights, VMEM-resident
            pl.BlockSpec(b_pack.shape, lambda i: (0, 0)),     # biases, VMEM-resident
            # TODO(synk): add pipeline_mode=pl.Buffered(1) on the constant weight/bias
            # specs once single-buffering is verified on the target jaxlib (hygiene only).
        ],
        out_specs=pl.BlockSpec((tile_b, _PAD), lambda i: (i, 0)),
        compiler_params=pltpu.CompilerParams(
            dimension_semantics=("parallel",)),   # megacore-shardable on v7x
    )(acts, w_pack, b_pack)

    return out[:B, enc_size:enc_size + num_outputs], out[:B, :enc_size]


def _reference_forward(a_t, e_t, x_t, a_next, p):
    h = jnp.maximum(e_t @ p["we1"] + p["be1"], 0.0)
    h = jnp.maximum(h @ p["we2"] + p["be2"], 0.0)
    enc = jnp.tanh(h @ p["wel"] + p["bel"])
    pi = jnp.concatenate([x_t, a_t, enc, a_next], axis=1)
    g = jnp.maximum(pi @ p["wq1"] + p["bq1"], 0.0)
    g = jnp.maximum(g @ p["wq2"] + p["bq2"], 0.0)
    return g @ p["wql"] + p["bql"], enc


if __name__ == "__main__":
    # Small shapes consistent with the module:
    B = 8            # batch
    A_DIM = 4        # action dim (a_t and a_next)
    E_DIM = 16       # environment-factor dim
    X_DIM = 12       # proprioceptive state dim
    ENC = 8          # model_config['encoding_size']
    ENC_H = (32, 32)       # model_config['encoder_hiddens']
    Q_H = (64, 64)         # model_config['q_hiddens']
    NUM_OUTPUTS = 1

    key = jax.random.PRNGKey(0)
    ks = jax.random.split(key, 16)

    def lin(kw, kb, i, o, scale):
        w = jax.random.normal(kw, (i, o), jnp.float32) * scale
        b = jax.random.normal(kb, (1, o), jnp.float32) * 0.01
        return w, b

    q_in = ENC + X_DIM + 2 * A_DIM  # encoding_size + prod(x) + 2*prod(a)

    params = {}
    params["we1"], params["be1"] = lin(ks[0], ks[1], E_DIM, ENC_H[0], 0.2)
    params["we2"], params["be2"] = lin(ks[2], ks[3], ENC_H[0], ENC_H[1], 0.2)
    params["wel"], params["bel"] = lin(ks[4], ks[5], ENC_H[1], ENC, 0.2)
    params["wq1"], params["bq1"] = lin(ks[6], ks[7], q_in, Q_H[0], 0.2)
    params["wq2"], params["bq2"] = lin(ks[8], ks[9], Q_H[0], Q_H[1], 0.2)
    params["wql"], params["bql"] = lin(ks[10], ks[11], Q_H[1], NUM_OUTPUTS, 0.2)

    a_t = jax.random.normal(ks[12], (B, A_DIM), jnp.float32)
    e_t = jax.random.normal(ks[13], (B, E_DIM), jnp.float32)
    x_t = jax.random.normal(ks[14], (B, X_DIM), jnp.float32)
    a_next = jax.random.normal(ks[15], (B, A_DIM), jnp.float32)

    q_ref, enc_ref = _reference_forward(a_t, e_t, x_t, a_next, params)

    # --- exact parity: f32 pack (packing happens once, outside the jitted forward) ---
    w32, b32 = pack_params(params, X_DIM, A_DIM, dtype=jnp.float32)
    q32, enc32 = oracle_q_forward(a_t, e_t, x_t, a_next, w32, b32,
                                  enc_size=ENC, num_outputs=NUM_OUTPUTS)
    q32 = jax.block_until_ready(q32)
    enc32 = jax.block_until_ready(enc32)
    assert q32.shape == (B, NUM_OUTPUTS) and enc32.shape == (B, ENC)
    assert jnp.allclose(q32, q_ref, atol=1e-5, rtol=1e-5)
    assert jnp.allclose(enc32, enc_ref, atol=1e-5, rtol=1e-5)

    # --- production path: bf16 at the MXU boundary, f32 accumulate / elementwise ---
    wbf, bbf = pack_params(params, X_DIM, A_DIM)  # bf16 default
    qbf, encbf = oracle_q_forward(a_t, e_t, x_t, a_next, wbf, bbf,
                                  enc_size=ENC, num_outputs=NUM_OUTPUTS)
    qbf = jax.block_until_ready(qbf)
    encbf = jax.block_until_ready(encbf)
    assert qbf.shape == (B, NUM_OUTPUTS) and encbf.shape == (B, ENC)
    assert jnp.allclose(qbf, q_ref, atol=1e-1, rtol=1e-1)
    assert jnp.allclose(encbf, enc_ref, atol=1e-1, rtol=1e-1)

    print("KERNEL_OK")
</pallas_src>

<mosaic_0001>
module attributes {stable_mosaic.version = 11 : i64} {
  func.func @_oracle_q_kernel(%arg0: i32, %arg1: memref<8x128xf32, #tpu.memory_space<vmem>>, %arg2: memref<768x128xf32, #tpu.memory_space<vmem>>, %arg3: memref<8x128xf32, #tpu.memory_space<vmem>>, %arg4: memref<8x128xf32, #tpu.memory_space<vmem>>) attributes {dimension_semantics = [#tpu.dimension_semantics<parallel>], iteration_bounds = array<i64: 1>, scalar_prefetch = 0 : i64, scratch_operands = 0 : i64, tpu.core_type = #tpu.core_type<tc>, window_params = [{transform_indices = @transform_0, window_bounds = array<i64: 8, 128>}, {pipeline_mode = #tpu.pipeline_mode<synchronous>, transform_indices = @transform_1, window_bounds = array<i64: 768, 128>}, {pipeline_mode = #tpu.pipeline_mode<synchronous>, transform_indices = @transform_2, window_bounds = array<i64: 8, 128>}, {transform_indices = @transform_3, window_bounds = array<i64: 8, 128>}]} {
    %c0 = arith.constant 0 : index
    %c0_0 = arith.constant 0 : index
    %0 = vector.load %arg1[%c0, %c0_0] : memref<8x128xf32, #tpu.memory_space<vmem>>, vector<8x128xf32>
    %c0_1 = arith.constant 0 : index
    %c0_2 = arith.constant 0 : index
    %1 = vector.load %arg2[%c0_1, %c0_2] : memref<768x128xf32, #tpu.memory_space<vmem>>, vector<128x128xf32>
    %cst = arith.constant dense<0.000000e+00> : vector<8x128xf32>
    %2 = tpu.matmul %0, %1, %cst {dimension_numbers = #tpu.dot_dimension_numbers<[1], [0], [0], [1], [0, 0, 1, 1], [], []>} : vector<8x128xf32>, vector<128x128xf32>, vector<8x128xf32> -> vector<8x128xf32>
    %c0_3 = arith.constant 0 : index
    %c0_4 = arith.constant 0 : index
    %3 = vector.load %arg3[%c0_3, %c0_4] : memref<8x128xf32, #tpu.memory_space<vmem>>, vector<1x128xf32>
    %4 = vector.broadcast %3 : vector<1x128xf32> to vector<8x128xf32>
    %5 = arith.addf %2, %4 : vector<8x128xf32>
    %cst_5 = arith.constant 0.000000e+00 : f32
    %6 = vector.broadcast %cst_5 : f32 to vector<8x128xf32>
    %7 = arith.maximumf %5, %6 : vector<8x128xf32>
    %c128 = arith.constant 128 : index
    %c0_6 = arith.constant 0 : index
    %8 = vector.load %arg2[%c128, %c0_6] : memref<768x128xf32, #tpu.memory_space<vmem>>, vector<128x128xf32>
    %cst_7 = arith.constant dense<0.000000e+00> : vector<8x128xf32>
    %9 = tpu.matmul %7, %8, %cst_7 {dimension_numbers = #tpu.dot_dimension_numbers<[1], [0], [0], [1], [0, 0, 1, 1], [], []>} : vector<8x128xf32>, vector<128x128xf32>, vector<8x128xf32> -> vector<8x128xf32>
    %c1 = arith.constant 1 : index
    %c0_8 = arith.constant 0 : index
    %10 = vector.load %arg3[%c1, %c0_8] : memref<8x128xf32, #tpu.memory_space<vmem>>, vector<1x128xf32>
    %11 = vector.broadcast %10 : vector<1x128xf32> to vector<8x128xf32>
    %12 = arith.addf %9, %11 : vector<8x128xf32>
    %cst_9 = arith.constant 0.000000e+00 : f32
    %13 = vector.broadcast %cst_9 : f32 to vector<8x128xf32>
    %14 = arith.maximumf %12, %13 : vector<8x128xf32>
    %c256 = arith.constant 256 : index
    %c0_10 = arith.constant 0 : index
    %15 = vector.load %arg2[%c256, %c0_10] : memref<768x128xf32, #tpu.memory_space<vmem>>, vector<128x128xf32>
    %cst_11 = arith.constant dense<0.000000e+00> : vector<8x128xf32>
    %16 = tpu.matmul %14, %15, %cst_11 {dimension_numbers = #tpu.dot_dimension_numbers<[1], [0], [0], [1], [0, 0, 1, 1], [], []>} : vector<8x128xf32>, vector<128x128xf32>, vector<8x128xf32> -> vector<8x128xf32>
    %c2 = arith.constant 2 : index
    %c0_12 = arith.constant 0 : index
    %17 = vector.load %arg3[%c2, %c0_12] : memref<8x128xf32, #tpu.memory_space<vmem>>, vector<1x128xf32>
    %18 = vector.broadcast %17 : vector<1x128xf32> to vector<8x128xf32>
    %19 = arith.addf %16, %18 : vector<8x128xf32>
    %20 = math.tanh %19 : vector<8x128xf32>
    %c384 = arith.constant 384 : index
    %c0_13 = arith.constant 0 : index
    %21 = vector.load %arg2[%c384, %c0_13] : memref<768x128xf32, #tpu.memory_space<vmem>>, vector<128x128xf32>
    %cst_14 = arith.constant dense<0.000000e+00> : vector<8x128xf32>
    %22 = tpu.matmul %20, %21, %cst_14 {dimension_numbers = #tpu.dot_dimension_numbers<[1], [0], [0], [1], [0, 0, 1, 1], [], []>} : vector<8x128xf32>, vector<128x128xf32>, vector<8x128xf32> -> vector<8x128xf32>
    %23 = arith.addf %5, %22 : vector<8x128xf32>
    %cst_15 = arith.constant 0.000000e+00 : f32
    %24 = vector.broadcast %cst_15 : f32 to vector<8x128xf32>
    %25 = arith.maximumf %23, %24 : vector<8x128xf32>
    %c512 = arith.constant 512 : index
    %c0_16 = arith.constant 0 : index
    %26 = vector.load %arg2[%c512, %c0_16] : memref<768x128xf32, #tpu.memory_space<vmem>>, vector<128x128xf32>
    %cst_17 = arith.constant dense<0.000000e+00> : vector<8x128xf32>
    %27 = tpu.matmul %25, %26, %cst_17 {dimension_numbers = #tpu.dot_dimension_numbers<[1], [0], [0], [1], [0, 0, 1, 1], [], []>} : vector<8x128xf32>, vector<128x128xf32>, vector<8x128xf32> -> vector<8x128xf32>
    %c4 = arith.constant 4 : index
    %c0_18 = arith.constant 0 : index
    %28 = vector.load %arg3[%c4, %c0_18] : memref<8x128xf32, #tpu.memory_space<vmem>>, vector<1x128xf32>
    %29 = vector.broadcast %28 : vector<1x128xf32> to vector<8x128xf32>
    %30 = arith.addf %27, %29 : vector<8x128xf32>
    %cst_19 = arith.constant 0.000000e+00 : f32
    %31 = vector.broadcast %cst_19 : f32 to vector<8x128xf32>
    %32 = arith.maximumf %30, %31 : vector<8x128xf32>
    %c640 = arith.constant 640 : index
    %c0_20 = arith.constant 0 : index
    %33 = vector.load %arg2[%c640, %c0_20] : memref<768x128xf32, #tpu.memory_space<vmem>>, vector<128x128xf32>
    %cst_21 = arith.constant dense<0.000000e+00> : vector<8x128xf32>
    %34 = tpu.matmul %32, %33, %cst_21 {dimension_numbers = #tpu.dot_dimension_numbers<[1], [0], [0], [1], [0, 0, 1, 1], [], []>} : vector<8x128xf32>, vector<128x128xf32>, vector<8x128xf32> -> vector<8x128xf32>
    %c5 = arith.constant 5 : index
    %c0_22 = arith.constant 0 : index
    %35 = vector.load %arg3[%c5, %c0_22] : memref<8x128xf32, #tpu.memory_space<vmem>>, vector<1x128xf32>
    %36 = vector.broadcast %35 : vector<1x128xf32> to vector<8x128xf32>
    %37 = arith.addf %34, %36 : vector<8x128xf32>
    %38 = arith.addf %20, %37 : vector<8x128xf32>
    %c0_23 = arith.constant 0 : index
    %c0_24 = arith.constant 0 : index
    %39 = vector.load %arg4[%c0_23, %c0_24] : memref<8x128xf32, #tpu.memory_space<vmem>>, vector<8x128xf32>
    tpu.vector_store %arg4[%c0_23, %c0_24], %38 {strides = array<i32>} : memref<8x128xf32, #tpu.memory_space<vmem>>, vector<8x128xf32>,
    return
  }
  func.func @transform_0(%arg0: i32) -> (i32, i32) {
    %c0_i32 = arith.constant 0 : i32
    %c0_i32_0 = arith.constant 0 : i32
    return %arg0, %c0_i32 : i32, i32
  }
  func.func @transform_1(%arg0: i32) -> (i32, i32) {
    %c0_i32 = arith.constant 0 : i32
    %c0_i32_0 = arith.constant 0 : i32
    %c0_i32_1 = arith.constant 0 : i32
    return %c0_i32, %c0_i32_0 : i32, i32
  }
  func.func @transform_2(%arg0: i32) -> (i32, i32) {
    %c0_i32 = arith.constant 0 : i32
    %c0_i32_0 = arith.constant 0 : i32
    %c0_i32_1 = arith.constant 0 : i32
    return %c0_i32, %c0_i32_0 : i32, i32
  }
  func.func @transform_3(%arg0: i32) -> (i32, i32) {
    %c0_i32 = arith.constant 0 : i32
    %c0_i32_0 = arith.constant 0 : i32
    return %arg0, %c0_i32 : i32, i32
  }
}

</mosaic_0001>

<bundles_post_ra>
// kernel: oracle_q_forward.1
= control target key start
LH: loop header
LB: loop body
LE: loop exit
PB: predicated region body
PF: predicated region fallthrough
CT: control target
= control target key end

     0   :  { %8 = vsyncpa [#allocation3], 0  ;;  %s929_s12 = smov [#allocation2]   ;;  %s1094_s0 = inlined_call_operand.vmem [shape: f32[8,128], index: 0, kind: input, shape index: {}]   ;;  %s1095_s1 = inlined_call_operand.hbm [shape: f32[768,128], index: 1, kind: input, shape index: {}]   ;;  %s1096_s2 = inlined_call_operand.vmem [shape: f32[8,128], index: 2, kind: input, shape index: {}]   ;;  %s1097_s3 = inlined_call_operand.vmem [shape: f32[8,128], index: 3, kind: output, shape index: {}]  }
   0x1   :  { %s16_s13 = sshll.u32 %s929_s12, 4  ;;  %s17_s13 = int_to_ptr.vmem [resolvable:$true] %s16_s13 }
   0x2   :  { %s915_s14 = scalar_lea.vmem %s17_s13, 12288  ;;  %p920_p1 = scmp.lt.s32.totalorder %s17_s13, %s17_s13 }
   0x3   :  { %p916_p0 = scmp.ne.s32.totalorder %s17_s13, %s915_s14  ;;  %p921_p2 = scmp.lt.s32.totalorder %s915_s14, %s915_s14 }
   0x5   :  { %p922_p3 = por %p921_p2, %p920_p1 }
   0x7   :  { %p923_p4 = pnand %p922_p3, %p916_p0 }
   0x9   :  { %926 = shalt.err (!%p923_p4)
}
   0xa   :  { %s930_s15 = smov 128   ;;  %s931_s16 = smov 8  }
   0xb   :  { %22 = dma.hbm_to_vmem [thread:$0]  %s1095_s1, 12288, %s17_s13, [#allocation3], %s930_s15, %s930_s15, %s931_s16  }
   0xc   :  { %927 = dma.done.wait [#allocation3], 12288  }
   0xd   :  { %928 = vsyncadd [#allocation3], 4294955008  ;;  %v932_v0 = vmov 0.0   ;;  %vm933_vm0 = vmmov 0   ;;  %v44_v1 = vld [vmem:[#allocation2 + $0x78] sm:$0xff]  ;;  %v43_v2 = vld [vmem:[#allocation2 + $0x70] sm:$0xff] }
   0xe   :  { %690 = vmatprep.subr.mxu0 %v932_v0  ;;  %722 = vmatprep.mubr.msk.f32.mxu0 %vm933_vm0, %v932_v0  ;;  %v42_v3 = vld [vmem:[#allocation2 + $0x68] sm:$0xff]  ;;  %v41_v4 = vld [vmem:[#allocation2 + $0x60] sm:$0xff]  ;;  %v136_v5 = vld [vmem:[#allocation2 + $0xf8] sm:$0xff] }
   0xf   :  { %725 = vmatprep.subr.mxu1 %v932_v0  ;;  %757 = vmatprep.mubr.msk.f32.mxu1 %vm933_vm0, %v932_v0  ;;  %v40_v6 = vld [vmem:[#allocation2 + $0x58] sm:$0xff]  ;;  %v135_v7 = vld [vmem:[#allocation2 + $0xf0] sm:$0xff]  ;;  %v134_v8 = vld [vmem:[#allocation2 + $0xe8] sm:$0xff] }
  0x10   :  { %691 = vmatpush3.msra.mxu0 %v44_v1  ;;  %726 = vmatpush3.msra.mxu1 %v136_v5  ;;  %v39_v9 = vld [vmem:[#allocation2 + $0x50] sm:$0xff]  ;;  %v133_v10 = vld [vmem:[#allocation2 + $0xe0] sm:$0xff]  ;;  %v38_v11 = vld [vmem:[#allocation2 + $0x48] sm:$0xff] }
  0x11   :  { %692 = vmatprep.subr.mxu0 %v932_v0  ;;  %727 = vmatprep.subr.mxu1 %v932_v0  ;;  %v132_v12 = vld [vmem:[#allocation2 + $0xd8] sm:$0xff]  ;;  %v37_v13 = vld [vmem:[#allocation2 + $0x40] sm:$0xff]  ;;  %v131_v14 = vld [vmem:[#allocation2 + $0xd0] sm:$0xff] }
  0x12   :  { %693 = vmatpush3.msra.mxu0 %v43_v2  ;;  %728 = vmatpush3.msra.mxu1 %v135_v7  ;;  %v36_v15 = vld [vmem:[#allocation2 + $0x38] sm:$0xff]  ;;  %v130_v16 = vld [vmem:[#allocation2 + $0xc8] sm:$0xff]  ;;  %v35_v17 = vld [vmem:[#allocation2 + $0x30] sm:$0xff] }
  0x13   :  { %694 = vmatprep.subr.mxu0 %v932_v0  ;;  %729 = vmatprep.subr.mxu1 %v932_v0  ;;  %v129_v18 = vld [vmem:[#allocation2 + $0xc0] sm:$0xff]  ;;  %v34_v19 = vld [vmem:[#allocation2 + $0x28] sm:$0xff]  ;;  %v128_v20 = vld [vmem:[#allocation2 + $0xb8] sm:$0xff] }
  0x14   :  { %695 = vmatpush3.msra.mxu0 %v42_v3  ;;  %730 = vmatpush3.msra.mxu1 %v134_v8  ;;  %v33_v21 = vld [vmem:[#allocation2 + $0x20] sm:$0xff]  ;;  %v127_v22 = vld [vmem:[#allocation2 + $0xb0] sm:$0xff]  ;;  %v32_v23 = vld [vmem:[#allocation2 + $0x18] sm:$0xff] }
  0x15   :  { %696 = vmatprep.subr.mxu0 %v932_v0  ;;  %731 = vmatprep.subr.mxu1 %v932_v0  ;;  %v126_v24 = vld [vmem:[#allocation2 + $0xa8] sm:$0xff]  ;;  %v31_v25 = vld [vmem:[#allocation2 + $0x10] sm:$0xff]  ;;  %v125_v26 = vld [vmem:[#allocation2 + $0xa0] sm:$0xff] }
  0x16   :  { %697 = vmatpush3.msra.mxu0 %v41_v4  ;;  %732 = vmatpush3.msra.mxu1 %v133_v10  ;;  %v30_v27 = vld [vmem:[#allocation2 + $0x8] sm:$0xff]  ;;  %v124_v28 = vld [vmem:[#allocation2 + $0x98] sm:$0xff]  ;;  %v29_v29 = vld [vmem:[#allocation2] sm:$0xff] }
  0x17   :  { %698 = vmatprep.subr.mxu0 %v932_v0  ;;  %733 = vmatprep.subr.mxu1 %v932_v0  ;;  %v28_v30 = vld [vmem:[%s1094_s0] sm:$0xff]  ;;  %v123_v31 = vld [vmem:[#allocation2 + $0x90] sm:$0xff]  ;;  %v122_v32 = vld [vmem:[#allocation2 + $0x88] sm:$0xff] }
  0x18   :  { %699 = vmatpush3.msra.mxu0 %v40_v6  ;;  %734 = vmatpush3.msra.mxu1 %v132_v12  ;;  %v121_v33 = vld [vmem:[#allocation2 + $0x80] sm:$0xff]  ;;  %v228_v34 = vld [vmem:[#allocation2 + $0x178] sm:$0xff]  ;;  %v227_v35 = vld [vmem:[#allocation2 + $0x170] sm:$0xff] }
  0x19   :  { %700 = vmatprep.subr.mxu0 %v932_v0  ;;  %735 = vmatprep.subr.mxu1 %v932_v0  ;;  %v226_v36 = vld [vmem:[#allocation2 + $0x168] sm:$0xff]  ;;  %v225_v37 = vld [vmem:[#allocation2 + $0x160] sm:$0xff]  ;;  %v224_v38 = vld [vmem:[#allocation2 + $0x158] sm:$0xff] }
  0x1a   :  { %701 = vmatpush3.msra.mxu0 %v39_v9  ;;  %736 = vmatpush3.msra.mxu1 %v131_v14  ;;  %v223_v39 = vld [vmem:[#allocation2 + $0x150] sm:$0xff]  ;;  %v222_v40 = vld [vmem:[#allocation2 + $0x148] sm:$0xff]  ;;  %v221_v41 = vld [vmem:[#allocation2 + $0x140] sm:$0xff] }
  0x1b   :  { %702 = vmatprep.subr.mxu0 %v932_v0  ;;  %737 = vmatprep.subr.mxu1 %v932_v0  ;;  %v220_v42 = vld [vmem:[#allocation2 + $0x138] sm:$0xff]  ;;  %v219_v43 = vld [vmem:[#allocation2 + $0x130] sm:$0xff]  ;;  %v218_v44 = vld [vmem:[#allocation2 + $0x128] sm:$0xff] }
  0x1c   :  { %703 = vmatpush3.msra.mxu0 %v38_v11  ;;  %738 = vmatpush3.msra.mxu1 %v130_v16  ;;  %v217_v45 = vld [vmem:[#allocation2 + $0x120] sm:$0xff]  ;;  %v216_v46 = vld [vmem:[#allocation2 + $0x118] sm:$0xff]  ;;  %v215_v52 = vld [vmem:[#allocation2 + $0x110] sm:$0xff] }
  0x1d   :  { %704 = vmatprep.subr.mxu0 %v932_v0  ;;  %739 = vmatprep.subr.mxu1 %v932_v0  ;;  %v583_v47 = vld [vmem:[%s1096_s2] ss:$0 sm:$0xff]  ;;  %v214_v53 = vld [vmem:[#allocation2 + $0x108] sm:$0xff]  ;;  %v320_v55 = vld [vmem:[#allocation2 + $0x1f8] sm:$0xff] }
  0x1e   :  { %705 = vmatpush3.msra.mxu0 %v37_v13  ;;  %740 = vmatpush3.msra.mxu1 %v129_v18  ;;  %v213_v54 = vld [vmem:[#allocation2 + $0x100] sm:$0xff]  ;;  %v319_v56 = vld [vmem:[#allocation2 + $0x1f0] sm:$0xff]  ;;  %v318_v57 = vld [vmem:[#allocation2 + $0x1e8] sm:$0xff] }
  0x1f   :  { %706 = vmatprep.subr.mxu0 %v932_v0  ;;  %741 = vmatprep.subr.mxu1 %v932_v0  ;;  %v317_v58 = vld [vmem:[#allocation2 + $0x1e0] sm:$0xff]  ;;  %v316_v59 = vld [vmem:[#allocation2 + $0x1d8] sm:$0xff]  ;;  %v315_v60 = vld [vmem:[#allocation2 + $0x1d0] sm:$0xff] }
  0x20   :  { %707 = vmatpush3.msra.mxu0 %v36_v15  ;;  %742 = vmatpush3.msra.mxu1 %v128_v20  ;;  %v314_v61 = vld [vmem:[#allocation2 + $0x1c8] sm:$0xff]  ;;  %v584_v62 = vld [vmem:[%s1096_s2 + $0x1] ss:$0 sm:$0xff]  ;;  %v312_v5 = vld [vmem:[#allocation2 + $0x1b8] sm:$0xff] }
  0x21   :  { %708 = vmatprep.subr.mxu0 %v932_v0  ;;  %743 = vmatprep.subr.mxu1 %v932_v0  ;;  %v313_v4 = vld [vmem:[#allocation2 + $0x1c0] sm:$0xff]  ;;  %v311_v6 = vld [vmem:[#allocation2 + $0x1b0] sm:$0xff]  ;;  %v310_v7 = vld [vmem:[#allocation2 + $0x1a8] sm:$0xff] }
  0x22   :  { %709 = vmatpush3.msra.mxu0 %v35_v17  ;;  %744 = vmatpush3.msra.mxu1 %v127_v22  ;;  %v309_v8 = vld [vmem:[#allocation2 + $0x1a0] sm:$0xff]  ;;  %v308_v9 = vld [vmem:[#allocation2 + $0x198] sm:$0xff]  ;;  %v307_v10 = vld [vmem:[#allocation2 + $0x190] sm:$0xff] }
  0x23   :  { %710 = vmatprep.subr.mxu0 %v932_v0  ;;  %745 = vmatprep.subr.mxu1 %v932_v0  ;;  %v306_v11 = vld [vmem:[#allocation2 + $0x188] sm:$0xff]  ;;  %v305_v12 = vld [vmem:[#allocation2 + $0x180] sm:$0xff]  ;;  %v408_v13 = vld [vmem:[#allocation2 + $0x278] sm:$0xff] }
  0x24   :  { %711 = vmatpush3.msra.mxu0 %v34_v19  ;;  %746 = vmatpush3.msra.mxu1 %v126_v24  ;;  %v407_v14 = vld [vmem:[#allocation2 + $0x270] sm:$0xff]  ;;  %v406_v15 = vld [vmem:[#allocation2 + $0x268] sm:$0xff]  ;;  %v405_v16 = vld [vmem:[#allocation2 + $0x260] sm:$0xff] }
  0x25   :  { %712 = vmatprep.subr.mxu0 %v932_v0  ;;  %747 = vmatprep.subr.mxu1 %v932_v0  ;;  %v404_v17 = vld [vmem:[#allocation2 + $0x258] sm:$0xff]  ;;  %v403_v18 = vld [vmem:[#allocation2 + $0x250] sm:$0xff]  ;;  %v402_v19 = vld [vmem:[#allocation2 + $0x248] sm:$0xff] }
  0x26   :  { %713 = vmatpush3.msra.mxu0 %v33_v21  ;;  %748 = vmatpush3.msra.mxu1 %v125_v26  ;;  %v401_v20 = vld [vmem:[#allocation2 + $0x240] sm:$0xff]  ;;  %v400_v21 = vld [vmem:[#allocation2 + $0x238] sm:$0xff]  ;;  %v399_v22 = vld [vmem:[#allocation2 + $0x230] sm:$0xff] }
  0x27   :  { %714 = vmatprep.subr.mxu0 %v932_v0  ;;  %749 = vmatprep.subr.mxu1 %v932_v0  ;;  %v397_v24 = vld [vmem:[#allocation2 + $0x220] sm:$0xff] }
  0x28   :  { %715 = vmatpush3.msra.mxu0 %v32_v23  ;;  %750 = vmatpush3.msra.mxu1 %v124_v28  ;;  %v398_v23 = vld [vmem:[#allocation2 + $0x228] sm:$0xff]  ;;  %v585_v26 = vld [vmem:[%s1096_s2 + $0x2] ss:$0 sm:$0xff] }
  0x29   :  { %716 = vmatprep.subr.mxu0 %v932_v0  ;;  %751 = vmatprep.subr.mxu1 %v932_v0 }
  0x2a   :  { %717 = vmatpush3.msra.mxu0 %v31_v25  ;;  %752 = vmatpush3.msra.mxu1 %v123_v31  ;;  %v396_v25 = vld [vmem:[#allocation2 + $0x218] sm:$0xff]  ;;  %v395_v31 = vld [vmem:[#allocation2 + $0x210] sm:$0xff] }
  0x2b   :  { %718 = vmatprep.subr.mxu0 %v932_v0  ;;  %753 = vmatprep.subr.mxu1 %v932_v0 }
  0x2c   :  { %719 = vmatpush3.msra.mxu0 %v30_v27  ;;  %754 = vmatpush3.msra.mxu1 %v122_v32  ;;  %v394_v32 = vld [vmem:[#allocation2 + $0x208] sm:$0xff] }
  0x2d   :  { %720 = vmatprep.subr.mxu0 %v932_v0  ;;  %755 = vmatprep.subr.mxu1 %v932_v0 }
  0x2e   :  { %721 = vmatpush3.msra.mxu0 %v29_v29  ;;  %756 = vmatpush3.msra.mxu1 %v121_v33  ;;  %v393_v33 = vld [vmem:[#allocation2 + $0x200] sm:$0xff] }
  0x2f   :  { %723 = vmatmul.mubr.f32.vlgmr.msra.gmra.mxu0 %v28_v30  ;;  %760 = vmatprep.subr.mxu0 %v932_v0 }
  0x30   :  { %792 = vmatprep.mubr.msk.f32.mxu0 %vm933_vm0, %v932_v0  ;;  %795 = vmatprep.subr.mxu1 %v932_v0 }
  0x31   :  { %761 = vmatpush3.msra.mxu0 %v228_v34  ;;  %v500_v34 = vld [vmem:[#allocation2 + $0x2f8] sm:$0xff] }
  0x32   :  { %762 = vmatprep.subr.mxu0 %v932_v0 }
  0x33   :  { %763 = vmatpush3.msra.mxu0 %v227_v35  ;;  %v499_v35 = vld [vmem:[#allocation2 + $0x2f0] sm:$0xff] }
  0x34   :  { %764 = vmatprep.subr.mxu0 %v932_v0 }
  0x35   :  { %765 = vmatpush3.msra.mxu0 %v226_v36  ;;  %v498_v36 = vld [vmem:[#allocation2 + $0x2e8] sm:$0xff] }
  0x36   :  { %766 = vmatprep.subr.mxu0 %v932_v0 }
  0x37   :  { %767 = vmatpush3.msra.mxu0 %v225_v37  ;;  %v497_v37 = vld [vmem:[#allocation2 + $0x2e0] sm:$0xff] }
  0x38   :  { %768 = vmatprep.subr.mxu0 %v932_v0 }
  0x39   :  { %769 = vmatpush3.msra.mxu0 %v224_v38  ;;  %v496_v38 = vld [vmem:[#allocation2 + $0x2d8] sm:$0xff] }
  0x3a   :  { %770 = vmatprep.subr.mxu0 %v932_v0 }
  0x3b   :  { %771 = vmatpush3.msra.mxu0 %v223_v39  ;;  %v495_v39 = vld [vmem:[#allocation2 + $0x2d0] sm:$0xff] }
  0x3c   :  { %772 = vmatprep.subr.mxu0 %v932_v0 }
  0x3d   :  { %773 = vmatpush3.msra.mxu0 %v222_v40  ;;  %v494_v40 = vld [vmem:[#allocation2 + $0x2c8] sm:$0xff] }
  0x3e   :  { %774 = vmatprep.subr.mxu0 %v932_v0 }
  0x3f   :  { %775 = vmatpush3.msra.mxu0 %v221_v41  ;;  %v493_v41 = vld [vmem:[#allocation2 + $0x2c0] sm:$0xff] }
  0x40   :  { %776 = vmatprep.subr.mxu0 %v932_v0 }
  0x41   :  { %777 = vmatpush3.msra.mxu0 %v220_v42  ;;  %v492_v42 = vld [vmem:[#allocation2 + $0x2b8] sm:$0xff] }
  0x42   :  { %778 = vmatprep.subr.mxu0 %v932_v0 }
  0x43   :  { %779 = vmatpush3.msra.mxu0 %v219_v43  ;;  %v491_v43 = vld [vmem:[#allocation2 + $0x2b0] sm:$0xff] }
  0x44   :  { %780 = vmatprep.subr.mxu0 %v932_v0 }
  0x45   :  { %781 = vmatpush3.msra.mxu0 %v218_v44  ;;  %v490_v44 = vld [vmem:[#allocation2 + $0x2a8] sm:$0xff] }
  0x46   :  { %782 = vmatprep.subr.mxu0 %v932_v0 }
  0x47   :  { %783 = vmatpush3.msra.mxu0 %v217_v45  ;;  %v489_v45 = vld [vmem:[#allocation2 + $0x2a0] sm:$0xff] }
  0x48   :  { %784 = vmatprep.subr.mxu0 %v932_v0 }
  0x49   :  { %785 = vmatpush3.msra.mxu0 %v216_v46  ;;  %v488_v46 = vld [vmem:[#allocation2 + $0x298] sm:$0xff] }
  0x4a   :  { %786 = vmatprep.subr.mxu0 %v932_v0 }
  0x4b   :  { %787 = vmatpush3.msra.mxu0 %v215_v52  ;;  %v487_v52 = vld [vmem:[#allocation2 + $0x290] sm:$0xff] }
  0x4c   :  { %788 = vmatprep.subr.mxu0 %v932_v0 }
  0x4d   :  { %789 = vmatpush3.msra.mxu0 %v214_v53  ;;  %v486_v53 = vld [vmem:[#allocation2 + $0x288] sm:$0xff] }
  0x4e   :  { %790 = vmatprep.subr.mxu0 %v932_v0 }
  0x4f   :  { %791 = vmatpush3.msra.mxu0 %v213_v54  ;;  %v485_v54 = vld [vmem:[#allocation2 + $0x280] sm:$0xff] }
  0x50   :  { %830 = vmatprep.subr.mxu0 %v932_v0 }
  0xef   :  { %v116_v48 = vpop.f32.mrf.mxu0 }
  0xf0   :  { %v1016_v49 = vadd.f32 %v583_v47, %v116_v48 }
  0xf1   :  { %v724_v50 = vpop.f32.mrf.mxu0 }
  0xf2   :  { %v120_v51 = vmax.f32 %v1016_v49, 0.0 }
  0xf4   :  { %758 = vmatmul.mubr.f32.vlgmr.msra.gmra.mxu1 %v120_v51 }
  0xf5   :  { %827 = vmatprep.mubr.msk.f32.mxu1 %vm933_vm0, %v932_v0  ;;  %796 = vmatpush3.msra.mxu1 %v320_v55  ;;  %v586_v55 = vld [vmem:[%s1096_s2 + $0x4] ss:$0 sm:$0xff] }
  0xf6   :  { %797 = vmatprep.subr.mxu1 %v932_v0 }
  0xf7   :  { %798 = vmatpush3.msra.mxu1 %v319_v56 }
  0xf8   :  { %799 = vmatprep.subr.mxu1 %v932_v0 }
  0xf9   :  { %800 = vmatpush3.msra.mxu1 %v318_v57 }
  0xfa   :  { %801 = vmatprep.subr.mxu1 %v932_v0 }
  0xfb   :  { %802 = vmatpush3.msra.mxu1 %v317_v58 }
  0xfc   :  { %803 = vmatprep.subr.mxu1 %v932_v0 }
  0xfd   :  { %804 = vmatpush3.msra.mxu1 %v316_v59  ;;  %v587_v59 = vld [vmem:[%s1096_s2 + $0x5] ss:$0 sm:$0xff] }
  0xfe   :  { %805 = vmatprep.subr.mxu1 %v932_v0 }
  0xff   :  { %806 = vmatpush3.msra.mxu1 %v315_v60 }
 0x100   :  { %807 = vmatprep.subr.mxu1 %v932_v0 }
 0x101   :  { %808 = vmatpush3.msra.mxu1 %v314_v61 }
 0x102   :  { %809 = vmatprep.subr.mxu1 %v932_v0 }
 0x103   :  { %810 = vmatpush3.msra.mxu1 %v313_v4 }
 0x104   :  { %811 = vmatprep.subr.mxu1 %v932_v0 }
 0x105   :  { %812 = vmatpush3.msra.mxu1 %v312_v5 }
 0x106   :  { %813 = vmatprep.subr.mxu1 %v932_v0 }
 0x107   :  { %814 = vmatpush3.msra.mxu1 %v311_v6 }
 0x108   :  { %815 = vmatprep.subr.mxu1 %v932_v0 }
 0x109   :  { %816 = vmatpush3.msra.mxu1 %v310_v7 }
 0x10a   :  { %817 = vmatprep.subr.mxu1 %v932_v0 }
 0x10b   :  { %818 = vmatpush3.msra.mxu1 %v309_v8 }
 0x10c   :  { %819 = vmatprep.subr.mxu1 %v932_v0 }
 0x10d   :  { %820 = vmatpush3.msra.mxu1 %v308_v9 }
 0x10e   :  { %821 = vmatprep.subr.mxu1 %v932_v0 }
 0x10f   :  { %822 = vmatpush3.msra.mxu1 %v307_v10 }
 0x110   :  { %823 = vmatprep.subr.mxu1 %v932_v0 }
 0x111   :  { %824 = vmatpush3.msra.mxu1 %v306_v11 }
 0x112   :  { %825 = vmatprep.subr.mxu1 %v932_v0 }
 0x113   :  { %826 = vmatpush3.msra.mxu1 %v305_v12 }
 0x114   :  { %865 = vmatprep.subr.mxu1 %v932_v0 }
 0x1b4   :  { %v208_v63 = vpop.f32.mrf.mxu1 }
 0x1b5   :  { %v209_v1 = vadd.f32 %v584_v62, %v208_v63 }
 0x1b6   :  { %v759_v2 = vpop.f32.mrf.mxu1 }
 0x1b7   :  { %v212_v3 = vmax.f32 %v209_v1, 0.0 }
 0x1b9   :  { %793 = vmatmul.mubr.f32.vlgmr.msra.gmra.mxu0 %v212_v3 }
 0x1ba   :  { %862 = vmatprep.mubr.msk.f32.mxu0 %vm933_vm0, %v932_v0  ;;  %831 = vmatpush3.msra.mxu0 %v408_v13 }
 0x1bb   :  { %832 = vmatprep.subr.mxu0 %v932_v0 }
 0x1bc   :  { %833 = vmatpush3.msra.mxu0 %v407_v14 }
 0x1bd   :  { %834 = vmatprep.subr.mxu0 %v932_v0 }
 0x1be   :  { %835 = vmatpush3.msra.mxu0 %v406_v15 }
 0x1bf   :  { %836 = vmatprep.subr.mxu0 %v932_v0 }
 0x1c0   :  { %837 = vmatpush3.msra.mxu0 %v405_v16 }
 0x1c1   :  { %838 = vmatprep.subr.mxu0 %v932_v0 }
 0x1c2   :  { %839 = vmatpush3.msra.mxu0 %v404_v17 }
 0x1c3   :  { %840 = vmatprep.subr.mxu0 %v932_v0 }
 0x1c4   :  { %841 = vmatpush3.msra.mxu0 %v403_v18 }
 0x1c5   :  { %842 = vmatprep.subr.mxu0 %v932_v0 }
 0x1c6   :  { %843 = vmatpush3.msra.mxu0 %v402_v19 }
 0x1c7   :  { %844 = vmatprep.subr.mxu0 %v932_v0 }
 0x1c8   :  { %845 = vmatpush3.msra.mxu0 %v401_v20 }
 0x1c9   :  { %846 = vmatprep.subr.mxu0 %v932_v0 }
 0x1ca   :  { %847 = vmatpush3.msra.mxu0 %v400_v21 }
 0x1cb   :  { %848 = vmatprep.subr.mxu0 %v932_v0 }
 0x1cc   :  { %849 = vmatpush3.msra.mxu0 %v399_v22 }
 0x1cd   :  { %850 = vmatprep.subr.mxu0 %v932_v0 }
 0x1ce   :  { %851 = vmatpush3.msra.mxu0 %v398_v23 }
 0x1cf   :  { %852 = vmatprep.subr.mxu0 %v932_v0 }
 0x1d0   :  { %853 = vmatpush3.msra.mxu0 %v397_v24 }
 0x1d1   :  { %854 = vmatprep.subr.mxu0 %v932_v0 }
 0x1d2   :  { %855 = vmatpush3.msra.mxu0 %v396_v25 }
 0x1d3   :  { %856 = vmatprep.subr.mxu0 %v932_v0 }
 0x1d4   :  { %857 = vmatpush3.msra.mxu0 %v395_v31 }
 0x1d5   :  { %858 = vmatprep.subr.mxu0 %v932_v0 }
 0x1d6   :  { %859 = vmatpush3.msra.mxu0 %v394_v32 }
 0x1d7   :  { %860 = vmatprep.subr.mxu0 %v932_v0 }
 0x1d8   :  { %861 = vmatpush3.msra.mxu0 %v393_v33 }
 0x279   :  { %v300_v27 = vpop.f32.mrf.mxu0 }
 0x27a   :  { %v301_v28 = vadd.f32 %v585_v26, %v300_v27 }
 0x27b   :  { %v794_v29 = vpop.f32.mrf.mxu0 }
 0x27c   :  { %905 = vtanh.f32 %v301_v28 }
 0x289   :  { %v1061_v30 = vpop.eup %905 }
 0x28a   :  { %828 = vmatmul.mubr.f32.vlgmr.msra.gmra.mxu1 %v1061_v30 }
 0x28b   :  { %897 = vmatprep.mubr.msk.f32.mxu1 %vm933_vm0, %v932_v0  ;;  %866 = vmatpush3.msra.mxu1 %v500_v34 }
 0x28c   :  { %867 = vmatprep.subr.mxu1 %v932_v0 }
 0x28d   :  { %868 = vmatpush3.msra.mxu1 %v499_v35 }
 0x28e   :  { %869 = vmatprep.subr.mxu1 %v932_v0 }
 0x28f   :  { %870 = vmatpush3.msra.mxu1 %v498_v36 }
 0x290   :  { %871 = vmatprep.subr.mxu1 %v932_v0 }
 0x291   :  { %872 = vmatpush3.msra.mxu1 %v497_v37 }
 0x292   :  { %873 = vmatprep.subr.mxu1 %v932_v0 }
 0x293   :  { %874 = vmatpush3.msra.mxu1 %v496_v38 }
 0x294   :  { %875 = vmatprep.subr.mxu1 %v932_v0 }
 0x295   :  { %876 = vmatpush3.msra.mxu1 %v495_v39 }
 0x296   :  { %877 = vmatprep.subr.mxu1 %v932_v0 }
 0x297   :  { %878 = vmatpush3.msra.mxu1 %v494_v40 }
 0x298   :  { %879 = vmatprep.subr.mxu1 %v932_v0 }
 0x299   :  { %880 = vmatpush3.msra.mxu1 %v493_v41 }
 0x29a   :  { %881 = vmatprep.subr.mxu1 %v932_v0 }
 0x29b   :  { %882 = vmatpush3.msra.mxu1 %v492_v42 }
 0x29c   :  { %883 = vmatprep.subr.mxu1 %v932_v0 }
 0x29d   :  { %884 = vmatpush3.msra.mxu1 %v491_v43 }
 0x29e   :  { %885 = vmatprep.subr.mxu1 %v932_v0 }
 0x29f   :  { %886 = vmatpush3.msra.mxu1 %v490_v44 }
 0x2a0   :  { %887 = vmatprep.subr.mxu1 %v932_v0 }
 0x2a1   :  { %888 = vmatpush3.msra.mxu1 %v489_v45 }
 0x2a2   :  { %889 = vmatprep.subr.mxu1 %v932_v0 }
 0x2a3   :  { %890 = vmatpush3.msra.mxu1 %v488_v46 }
 0x2a4   :  { %891 = vmatprep.subr.mxu1 %v932_v0 }
 0x2a5   :  { %892 = vmatpush3.msra.mxu1 %v487_v52 }
 0x2a6   :  { %893 = vmatprep.subr.mxu1 %v932_v0 }
 0x2a7   :  { %894 = vmatpush3.msra.mxu1 %v486_v53 }
 0x2a8   :  { %895 = vmatprep.subr.mxu1 %v932_v0 }
 0x2a9   :  { %896 = vmatpush3.msra.mxu1 %v485_v54 }
 0x34a   :  { %v387_v47 = vpop.f32.mrf.mxu1 }
 0x34b   :  { %v391_v48 = vadd.f32 %v387_v47, %v1016_v49 }
 0x34c   :  { %v829_v50 = vpop.f32.mrf.mxu1 }
 0x34d   :  { %v392_v51 = vmax.f32 %v391_v48, 0.0 }
 0x34f   :  { %863 = vmatmul.mubr.f32.vlgmr.msra.gmra.mxu0 %v392_v51 }
 0x40f   :  { %v480_v56 = vpop.f32.mrf.mxu0 }
 0x410   :  { %v481_v57 = vadd.f32 %v586_v55, %v480_v56 }
 0x411   :  { %v864_v49 = vpop.f32.mrf.mxu0 }
 0x412   :  { %v484_v58 = vmax.f32 %v481_v57, 0.0 }
 0x414   :  { %898 = vmatmul.mubr.f32.vlgmr.msra.gmra.mxu1 %v484_v58 }
 0x4d4   :  { %v572_v60 = vpop.f32.mrf.mxu1 }
 0x4d5   :  { %v573_v61 = vadd.f32 %v587_v59, %v572_v60 }
 0x4d6   :  { %v899_v62 = vpop.f32.mrf.mxu1 }
 0x4d7   :  { %v576_v0 = vadd.f32 %v1061_v30, %v573_v61 }
 0x4d9   :  { %577 = vst [vmem:[%s1097_s3] sm:$0xff] %v576_v0 }
 0x4da   :  { %582 = vsyncpa [#allocation3], 1 }

</bundles_post_ra>
